<compile_context>
chip_gen: v7x
topology: tpu7x:2x2x1
jax: 0.10.0
libtpu: 0.0.40
codegen_flags: <defaults>
</compile_context>

<pallas_src>
import functools

import jax
import jax.numpy as jnp
from jax.experimental import pallas as pl
from jax.experimental.pallas import tpu as pltpu


# --------------------------------------------------------------------------- #
# Kernels
# --------------------------------------------------------------------------- #
def _fused_mlp(x, w1_ref, b1_ref, w2_ref, b2_ref, w3_ref, b3_ref):
    """3-layer fused (f|g) MLP: bf16 MXU operands, f32 accumulation."""
    h = jnp.dot(x.astype(jnp.bfloat16), w1_ref[...],
                preferred_element_type=jnp.float32) + b1_ref[...]
    h = jnp.maximum(h, 0.0)                                   # ReLU (VPU)
    h = jnp.dot(h.astype(jnp.bfloat16), w2_ref[...],
                preferred_element_type=jnp.float32) + b2_ref[...]
    h = jnp.maximum(h, 0.0)
    return jnp.dot(h.astype(jnp.bfloat16), w3_ref[...],
                   preferred_element_type=jnp.float32) + b3_ref[...]


def nominal_dynamics_fwd_kernel(x_ref, w1_ref, b1_ref, w2_ref, b2_ref,
                                w3_ref, b3_ref, f_ref, g_ref, *,
                                state_dim, num_action, f_pad):
    """One batch tile -> f [bm, S] and g [bm, S*A] written directly (no slab)."""
    out = _fused_mlp(x_ref[...], w1_ref, b1_ref, w2_ref, b2_ref, w3_ref, b3_ref)
    # f lives in cols [0, S); g lives in cols [f_pad, f_pad + S*A) -> both
    # slices start on a 128-lane (vreg) boundary.
    f_ref[...] = out[:, :state_dim].astype(f_ref.dtype)
    g_ref[...] = out[:, f_pad:f_pad + state_dim * num_action].astype(g_ref.dtype)


def nominal_dynamics_prop_kernel(x_ref, act_ref, w1_ref, b1_ref, w2_ref, b2_ref,
                                 w3_ref, b3_ref, o_ref, *,
                                 state_dim, num_action, f_pad, dt):
    """Fused forward_prop epilogue: state_nom = state + (f + g@u) * dt."""
    x = x_ref[...]
    out = _fused_mlp(x, w1_ref, b1_ref, w2_ref, b2_ref, w3_ref, b3_ref)
    act = act_ref[...]                               # [bm, num_action]
    sdot = out[:, :state_dim]                        # f(state)
    for a in range(num_action):                      # num_action VPU FMAs
        base = f_pad * (1 + a)
        sdot = sdot + out[:, base:base + state_dim] * act[:, a:a + 1]
    o_ref[...] = (x + sdot * dt).astype(o_ref.dtype)


# --------------------------------------------------------------------------- #
# Parameter init (matches the torch module's layer shapes) + fusion / padding
# --------------------------------------------------------------------------- #
def _round_up(n, m):
    return ((n + m - 1) // m) * m


def init_params(key, state_dim, hidden_dim, num_action, num_layer=3,
                dtype=jnp.float32):
    """Raw per-head MLP params (torch-like init), stored as [in,out] / [1,out].

    f: [state_dim] + [hidden]*(num_layer-1) + [state_dim]
    g: [state_dim] + [hidden]*(num_layer-1) + [state_dim * num_action]
    """
    dims_f = [state_dim] + [hidden_dim] * (num_layer - 1) + [state_dim]
    dims_g = [state_dim] + [hidden_dim] * (num_layer - 1) + [state_dim * num_action]

    def make_mlp(key, dims):
        params = []
        for i in range(len(dims) - 1):
            key, kw, kb = jax.random.split(key, 3)
            bound = 1.0 / float(jnp.sqrt(jnp.asarray(dims[i], jnp.float32)))
            w = jax.random.uniform(kw, (dims[i], dims[i + 1]),
                                   minval=-bound, maxval=bound, dtype=dtype)
            b = jax.random.uniform(kb, (1, dims[i + 1]),
                                   minval=-bound, maxval=bound, dtype=dtype)
            params += [w, b]
        return key, params

    key, pf = make_mlp(key, dims_f)
    key, pg = make_mlp(key, dims_g)
    return pf + pg   # flat: w1f,b1f,w2f,b2f,w3f,b3f, w1g,b1g,w2g,b2g,w3g,b3g


def fuse_params(params, state_dim, hidden_dim, num_action,
                weight_dtype=jnp.bfloat16, bias_dtype=jnp.float32):
    """Build the fused, 128-lane-padded, bf16 weights the kernels consume.

    Returns (fwd_params, prop_params); the two share W1/b1/W2/b2 and differ only
    in the third-layer column layout (prop groups g's columns per action).
    Padded lanes are exact zeros, so results match the unfused reference up to
    bf16 rounding.
    """
    w1f, b1f, w2f, b2f, w3f, b3f = params[:6]
    w1g, b1g, w2g, b2g, w3g, b3g = params[6:]

    S, H, A = state_dim, hidden_dim, num_action
    H2 = 2 * H
    # TODO(synk): if hidden_dim grows, round H2p toward a multiple of 256 on
    # v6e/v7x so the middle matmul fills the 256-wide MXU.
    H2p = _round_up(H2, 128)
    FPAD = _round_up(S, 128)                 # f block width (lane-aligned)
    GPAD = _round_up(S * A, 128)             # g block width (forward layout)

    def wcast(w):
        return w.astype(weight_dtype)

    W1 = jnp.zeros((S, H2p), weight_dtype)
    W1 = W1.at[:, :H].set(wcast(w1f)).at[:, H:H2].set(wcast(w1g))
    b1 = jnp.zeros((1, H2p), bias_dtype).at[:, :H].set(b1f).at[:, H:H2].set(b1g)

    W2 = jnp.zeros((H2p, H2p), weight_dtype)
    W2 = W2.at[:H, :H].set(wcast(w2f)).at[H:H2, H:H2].set(wcast(w2g))
    b2 = jnp.zeros((1, H2p), bias_dtype).at[:, :H].set(b2f).at[:, H:H2].set(b2g)

    # forward layout: f in cols [0, S); g in cols [FPAD, FPAD + S*A).
    W3 = jnp.zeros((H2p, FPAD + GPAD), weight_dtype)
    W3 = W3.at[:H, :S].set(wcast(w3f))
    W3 = W3.at[H:H2, FPAD:FPAD + S * A].set(wcast(w3g))
    b3 = jnp.zeros((1, FPAD + GPAD), bias_dtype)
    b3 = b3.at[:, :S].set(b3f).at[:, FPAD:FPAD + S * A].set(b3g)

    # forward_prop layout: f in cols [0, S); g's columns for action a in
    # cols [FPAD*(1+a), FPAD*(1+a) + S)   (torch g.view(B, S, A) -> col s*A+a).
    W3p = jnp.zeros((H2p, FPAD * (1 + A)), weight_dtype)
    W3p = W3p.at[:H, :S].set(wcast(w3f))
    b3p = jnp.zeros((1, FPAD * (1 + A)), bias_dtype).at[:, :S].set(b3f)
    w3g_r = w3g.reshape(H, S, A)
    b3g_r = b3g.reshape(1, S, A)
    for a in range(A):
        base = FPAD * (1 + a)
        W3p = W3p.at[H:H2, base:base + S].set(wcast(w3g_r[:, :, a]))
        b3p = b3p.at[:, base:base + S].set(b3g_r[:, :, a])

    fwd = (W1, b1, W2, b2, W3, b3)
    prop = (W1, b1, W2, b2, W3p, b3p)
    return fwd, prop


# --------------------------------------------------------------------------- #
# Tiling / wrappers
# --------------------------------------------------------------------------- #
def _tile(B, bm=None):
    """Pick a batch tile and a (possibly padded) batch size.

    - tiny B: one tile (per-grid-step overhead ~0.35us dominates);
    - B > 128: at least 2 tiles so v7x's two TensorCores both get work;
    - large B: 512-row tiles (~85% of HBM roofline, several steps per core);
    - awkward B: padded up instead of falling back to tiny tiles or bm == B.
    """
    if bm is None:
        if B <= 128:
            bm = max(8, _round_up(B, 8))
        elif B <= 1024:
            bm = _round_up(pl.cdiv(B, 2), 8)
        else:
            bm = 512
    Bp = _round_up(B, bm)
    return bm, Bp


def _weight_specs(params):
    # Constant index_map -> each weight is DMA'd once and stays VMEM-resident.
    # TODO(synk): mark these pipeline_mode=pl.Buffered(1) (single-buffered) once
    # verified on the target jax build; default double-buffering only costs
    # ~120 KB of VMEM here.
    return [pl.BlockSpec(p.shape, lambda i: (0, 0)) for p in params]


def _compiler_params():
    return pltpu.CompilerParams(
        dimension_semantics=("parallel",),
        vmem_limit_bytes=32 * 1024 * 1024,   # v5e's scoped default is only 16 MiB
    )


def _cost(Bp, params, in_lanes, out_lanes):
    W1, _, W2, _, W3, _ = params
    flops = 2 * Bp * (W1.shape[0] * W1.shape[1]
                      + W2.shape[0] * W2.shape[1]
                      + W3.shape[0] * W3.shape[1])
    bytes_acc = (Bp * in_lanes * 4 + Bp * out_lanes * 4
                 + sum(int(p.size) * p.dtype.itemsize for p in params))
    return pl.CostEstimate(flops=flops, transcendentals=0,
                           bytes_accessed=bytes_acc)


def nominal_dynamics_forward(state, fwd_params, state_dim, num_action, *, bm=None):
    """Returns (f(state), g(state)) like NominalDynamics.forward."""
    B, S = state.shape
    out_f, out_g = state_dim, state_dim * num_action
    f_pad = _round_up(state_dim, 128)

    bm, Bp = _tile(B, bm)
    if Bp != B:
        state = jnp.pad(state, ((0, Bp - B), (0, 0)))
    grid = Bp // bm

    kern = functools.partial(nominal_dynamics_fwd_kernel,
                             state_dim=state_dim, num_action=num_action,
                             f_pad=f_pad)
    f, g = pl.pallas_call(
        kern,
        out_shape=(jax.ShapeDtypeStruct((Bp, out_f), state.dtype),
                   jax.ShapeDtypeStruct((Bp, out_g), state.dtype)),
        grid_spec=pltpu.PrefetchScalarGridSpec(
            num_scalar_prefetch=0,
            grid=(grid,),
            in_specs=[pl.BlockSpec((bm, S), lambda i: (i, 0))]
                     + _weight_specs(fwd_params),
            out_specs=(pl.BlockSpec((bm, out_f), lambda i: (i, 0)),
                       pl.BlockSpec((bm, out_g), lambda i: (i, 0))),
        ),
        compiler_params=_compiler_params(),
        cost_estimate=_cost(Bp, fwd_params, S, out_f + out_g),
    )(state, *fwd_params)

    if Bp != B:
        f, g = f[:B], g[:B]
    return f, g


def nominal_dynamics_state_nom(state, action, prop_params, state_dim, num_action,
                               dt=0.1, *, bm=None):
    """state + (f(state) + g(state) @ action) * dt, fully fused in one kernel."""
    B, S = state.shape
    f_pad = _round_up(state_dim, 128)

    bm, Bp = _tile(B, bm)
    if Bp != B:
        state = jnp.pad(state, ((0, Bp - B), (0, 0)))
        action = jnp.pad(action, ((0, Bp - B), (0, 0)))
    grid = Bp // bm

    kern = functools.partial(nominal_dynamics_prop_kernel,
                             state_dim=state_dim, num_action=num_action,
                             f_pad=f_pad, dt=dt)
    nom = pl.pallas_call(
        kern,
        out_shape=jax.ShapeDtypeStruct((Bp, state_dim), state.dtype),
        grid_spec=pltpu.PrefetchScalarGridSpec(
            num_scalar_prefetch=0,
            grid=(grid,),
            in_specs=[pl.BlockSpec((bm, S), lambda i: (i, 0)),
                      pl.BlockSpec((bm, num_action), lambda i: (i, 0))]
                     + _weight_specs(prop_params),
            out_specs=pl.BlockSpec((bm, state_dim), lambda i: (i, 0)),
        ),
        compiler_params=_compiler_params(),
        cost_estimate=_cost(Bp, prop_params, S + num_action, state_dim),
    )(state, action, *prop_params)

    if Bp != B:
        nom = nom[:B]
    return nom


def nominal_dynamics_forward_prop(state, action, next_state, prop_params,
                                  state_dim, num_action, dt=0.1, *, bm=None):
    """Matches module.forward_prop; `.detach()` -> jax.lax.stop_gradient."""
    state_nom = nominal_dynamics_state_nom(state, action, prop_params,
                                           state_dim, num_action, dt, bm=bm)
    return state_nom + jax.lax.stop_gradient(next_state - state_nom)


# --------------------------------------------------------------------------- #
# Plain-JAX reference (two separate un-padded f32 MLPs, mirrors the torch module)
# --------------------------------------------------------------------------- #
def _reference_forward(state, params):
    def mlp3(x, w1, b1, w2, b2, w3, b3):
        h = jnp.maximum(x @ w1 + b1, 0.0)
        h = jnp.maximum(h @ w2 + b2, 0.0)
        return h @ w3 + b3
    return mlp3(state, *params[:6]), mlp3(state, *params[6:])


if __name__ == "__main__":
    # Module defaults (num_layer=3), small batch.
    B, STATE_DIM, HIDDEN_DIM, NUM_ACTION, NUM_LAYER, DT = 32, 72, 64, 2, 3, 0.1

    key = jax.random.PRNGKey(0)
    key, kx, ka, kn = jax.random.split(key, 4)
    state = jax.random.normal(kx, (B, STATE_DIM), dtype=jnp.float32)
    action = jax.random.normal(ka, (B, NUM_ACTION), dtype=jnp.float32)
    next_state = jax.random.normal(kn, (B, STATE_DIM), dtype=jnp.float32)

    raw_params = init_params(key, STATE_DIM, HIDDEN_DIM, NUM_ACTION, NUM_LAYER)
    fwd_params, prop_params = fuse_params(raw_params, STATE_DIM, HIDDEN_DIM,
                                          NUM_ACTION)

    f_out, g_out = nominal_dynamics_forward(state, fwd_params, STATE_DIM, NUM_ACTION)
    nom_out = nominal_dynamics_state_nom(state, action, prop_params,
                                         STATE_DIM, NUM_ACTION, dt=DT)
    prop_out = nominal_dynamics_forward_prop(state, action, next_state, prop_params,
                                             STATE_DIM, NUM_ACTION, dt=DT)
    jax.block_until_ready((f_out, g_out, nom_out, prop_out))

    # f32 references (unfused, un-padded).
    f_ref, g_ref = _reference_forward(state, raw_params)
    gu_ref = jnp.einsum('bsa,ba->bs',
                        g_ref.reshape(B, STATE_DIM, NUM_ACTION), action)
    nom_ref = state + (f_ref + gu_ref) * DT

    assert f_out.shape == (B, STATE_DIM)
    assert g_out.shape == (B, STATE_DIM * NUM_ACTION)
    assert nom_out.shape == (B, STATE_DIM)
    assert prop_out.shape == (B, STATE_DIM)
    # bf16 MXU operands (f32 accumulation) -> ~1e-3 abs error at these scales;
    # use a comfortable tolerance vs the f32 reference.
    assert jnp.allclose(f_out, f_ref, atol=3e-2, rtol=3e-2)
    assert jnp.allclose(g_out, g_ref, atol=3e-2, rtol=3e-2)
    assert jnp.allclose(nom_out, nom_ref, atol=3e-2, rtol=3e-2)
    # Straight-through residual: forward value equals next_state.
    assert jnp.allclose(prop_out, next_state, atol=1e-4, rtol=1e-4)

    print("KERNEL_OK")
</pallas_src>

<mosaic_0001>
module attributes {stable_mosaic.version = 11 : i64} {
  func.func @nominal_dynamics_fwd_kernel(%arg0: i32, %arg1: memref<32x72xf32, #tpu.memory_space<vmem>>, %arg2: memref<72x128xbf16, #tpu.memory_space<vmem>>, %arg3: memref<1x128xf32, #tpu.memory_space<vmem>>, %arg4: memref<128x128xbf16, #tpu.memory_space<vmem>>, %arg5: memref<1x128xf32, #tpu.memory_space<vmem>>, %arg6: memref<128x384xbf16, #tpu.memory_space<vmem>>, %arg7: memref<1x384xf32, #tpu.memory_space<vmem>>, %arg8: memref<32x72xf32, #tpu.memory_space<vmem>>, %arg9: memref<32x144xf32, #tpu.memory_space<vmem>>) attributes {dimension_semantics = [#tpu.dimension_semantics<parallel>], iteration_bounds = array<i64: 1>, scalar_prefetch = 0 : i64, scratch_operands = 0 : i64, tpu.core_type = #tpu.core_type<tc>, window_params = [{transform_indices = @transform_0, window_bounds = array<i64: 32, 72>}, {pipeline_mode = #tpu.pipeline_mode<synchronous>, transform_indices = @transform_1, window_bounds = array<i64: 72, 128>}, {pipeline_mode = #tpu.pipeline_mode<synchronous>, transform_indices = @transform_2, window_bounds = array<i64: 1, 128>}, {pipeline_mode = #tpu.pipeline_mode<synchronous>, transform_indices = @transform_3, window_bounds = array<i64: 128, 128>}, {pipeline_mode = #tpu.pipeline_mode<synchronous>, transform_indices = @transform_4, window_bounds = array<i64: 1, 128>}, {pipeline_mode = #tpu.pipeline_mode<synchronous>, transform_indices = @transform_5, window_bounds = array<i64: 128, 384>}, {pipeline_mode = #tpu.pipeline_mode<synchronous>, transform_indices = @transform_6, window_bounds = array<i64: 1, 384>}, {transform_indices = @transform_7, window_bounds = array<i64: 32, 72>}, {transform_indices = @transform_8, window_bounds = array<i64: 32, 144>}]} {
    %c0 = arith.constant 0 : index
    %c0_0 = arith.constant 0 : index
    %0 = vector.load %arg1[%c0, %c0_0] : memref<32x72xf32, #tpu.memory_space<vmem>>, vector<32x72xf32>
    %1 = arith.truncf %0 : vector<32x72xf32> to vector<32x72xbf16>
    %c0_1 = arith.constant 0 : index
    %c0_2 = arith.constant 0 : index
    %2 = vector.load %arg2[%c0_1, %c0_2] : memref<72x128xbf16, #tpu.memory_space<vmem>>, vector<72x128xbf16>
    %cst = arith.constant dense<0.000000e+00> : vector<32x128xf32>
    %3 = tpu.matmul %1, %2, %cst {dimension_numbers = #tpu.dot_dimension_numbers<[1], [0], [0], [1], [0, 0, 1, 1], [], []>} : vector<32x72xbf16>, vector<72x128xbf16>, vector<32x128xf32> -> vector<32x128xf32>
    %c0_3 = arith.constant 0 : index
    %c0_4 = arith.constant 0 : index
    %4 = vector.load %arg3[%c0_3, %c0_4] : memref<1x128xf32, #tpu.memory_space<vmem>>, vector<1x128xf32>
    %5 = vector.broadcast %4 : vector<1x128xf32> to vector<32x128xf32>
    %6 = arith.addf %3, %5 : vector<32x128xf32>
    %cst_5 = arith.constant 0.000000e+00 : f32
    %7 = vector.broadcast %cst_5 : f32 to vector<32x128xf32>
    %8 = arith.maximumf %6, %7 : vector<32x128xf32>
    %9 = arith.truncf %8 : vector<32x128xf32> to vector<32x128xbf16>
    %c0_6 = arith.constant 0 : index
    %c0_7 = arith.constant 0 : index
    %10 = vector.load %arg4[%c0_6, %c0_7] : memref<128x128xbf16, #tpu.memory_space<vmem>>, vector<128x128xbf16>
    %cst_8 = arith.constant dense<0.000000e+00> : vector<32x128xf32>
    %11 = tpu.matmul %9, %10, %cst_8 {dimension_numbers = #tpu.dot_dimension_numbers<[1], [0], [0], [1], [0, 0, 1, 1], [], []>} : vector<32x128xbf16>, vector<128x128xbf16>, vector<32x128xf32> -> vector<32x128xf32>
    %c0_9 = arith.constant 0 : index
    %c0_10 = arith.constant 0 : index
    %12 = vector.load %arg5[%c0_9, %c0_10] : memref<1x128xf32, #tpu.memory_space<vmem>>, vector<1x128xf32>
    %13 = vector.broadcast %12 : vector<1x128xf32> to vector<32x128xf32>
    %14 = arith.addf %11, %13 : vector<32x128xf32>
    %cst_11 = arith.constant 0.000000e+00 : f32
    %15 = vector.broadcast %cst_11 : f32 to vector<32x128xf32>
    %16 = arith.maximumf %14, %15 : vector<32x128xf32>
    %17 = arith.truncf %16 : vector<32x128xf32> to vector<32x128xbf16>
    %c0_12 = arith.constant 0 : index
    %c0_13 = arith.constant 0 : index
    %18 = vector.load %arg6[%c0_12, %c0_13] : memref<128x384xbf16, #tpu.memory_space<vmem>>, vector<128x384xbf16>
    %cst_14 = arith.constant dense<0.000000e+00> : vector<32x384xf32>
    %19 = tpu.matmul %17, %18, %cst_14 {dimension_numbers = #tpu.dot_dimension_numbers<[1], [0], [0], [1], [0, 0, 1, 1], [], []>} : vector<32x128xbf16>, vector<128x384xbf16>, vector<32x384xf32> -> vector<32x384xf32>
    %c0_15 = arith.constant 0 : index
    %c0_16 = arith.constant 0 : index
    %20 = vector.load %arg7[%c0_15, %c0_16] : memref<1x384xf32, #tpu.memory_space<vmem>>, vector<1x384xf32>
    %21 = vector.broadcast %20 : vector<1x384xf32> to vector<32x384xf32>
    %22 = arith.addf %19, %21 : vector<32x384xf32>
    %23 = vector.extract_strided_slice %22 {offsets = [0, 0], sizes = [32, 72], strides = [1, 1]} : vector<32x384xf32> to vector<32x72xf32>
    %c0_17 = arith.constant 0 : index
    %c0_18 = arith.constant 0 : index
    %24 = vector.load %arg8[%c0_17, %c0_18] : memref<32x72xf32, #tpu.memory_space<vmem>>, vector<32x72xf32>
    tpu.vector_store %arg8[%c0_17, %c0_18], %23 {strides = array<i32>} : memref<32x72xf32, #tpu.memory_space<vmem>>, vector<32x72xf32>,
    %25 = vector.extract_strided_slice %22 {offsets = [0, 128], sizes = [32, 144], strides = [1, 1]} : vector<32x384xf32> to vector<32x144xf32>
    %c0_19 = arith.constant 0 : index
    %c0_20 = arith.constant 0 : index
    %26 = vector.load %arg9[%c0_19, %c0_20] : memref<32x144xf32, #tpu.memory_space<vmem>>, vector<32x144xf32>
    tpu.vector_store %arg9[%c0_19, %c0_20], %25 {strides = array<i32>} : memref<32x144xf32, #tpu.memory_space<vmem>>, vector<32x144xf32>,
    return
  }
  func.func @transform_0(%arg0: i32) -> (i32, i32) {
    %c0_i32 = arith.constant 0 : i32
    %c0_i32_0 = arith.constant 0 : i32
    return %arg0, %c0_i32 : i32, i32
  }
  func.func @transform_1(%arg0: i32) -> (i32, i32) {
    %c0_i32 = arith.constant 0 : i32
    %c0_i32_0 = arith.constant 0 : i32
    %c0_i32_1 = arith.constant 0 : i32
    return %c0_i32, %c0_i32_0 : i32, i32
  }
  func.func @transform_2(%arg0: i32) -> (i32, i32) {
    %c0_i32 = arith.constant 0 : i32
    %c0_i32_0 = arith.constant 0 : i32
    %c0_i32_1 = arith.constant 0 : i32
    return %c0_i32, %c0_i32_0 : i32, i32
  }
  func.func @transform_3(%arg0: i32) -> (i32, i32) {
    %c0_i32 = arith.constant 0 : i32
    %c0_i32_0 = arith.constant 0 : i32
    %c0_i32_1 = arith.constant 0 : i32
    return %c0_i32, %c0_i32_0 : i32, i32
  }
  func.func @transform_4(%arg0: i32) -> (i32, i32) {
    %c0_i32 = arith.constant 0 : i32
    %c0_i32_0 = arith.constant 0 : i32
    %c0_i32_1 = arith.constant 0 : i32
    return %c0_i32, %c0_i32_0 : i32, i32
  }
  func.func @transform_5(%arg0: i32) -> (i32, i32) {
    %c0_i32 = arith.constant 0 : i32
    %c0_i32_0 = arith.constant 0 : i32
    %c0_i32_1 = arith.constant 0 : i32
    return %c0_i32, %c0_i32_0 : i32, i32
  }
  func.func @transform_6(%arg0: i32) -> (i32, i32) {
    %c0_i32 = arith.constant 0 : i32
    %c0_i32_0 = arith.constant 0 : i32
    %c0_i32_1 = arith.constant 0 : i32
    return %c0_i32, %c0_i32_0 : i32, i32
  }
  func.func @transform_7(%arg0: i32) -> (i32, i32) {
    %c0_i32 = arith.constant 0 : i32
    %c0_i32_0 = arith.constant 0 : i32
    return %arg0, %c0_i32 : i32, i32
  }
  func.func @transform_8(%arg0: i32) -> (i32, i32) {
    %c0_i32 = arith.constant 0 : i32
    %c0_i32_0 = arith.constant 0 : i32
    return %arg0, %c0_i32 : i32, i32
  }
}

</mosaic_0001>

<bundles_post_ra>
// kernel: tpu_custom_call.1
= control target key start
LH: loop header
LB: loop body
LE: loop exit
PB: predicated region body
PF: predicated region fallthrough
CT: control target
= control target key end

     0   :  { %14 = vsyncpa [#allocation3], 0  ;;  %s1156_s0 = inlined_call_operand.hbm [shape: f32[32,72], index: 0, kind: input, shape index: {}]   ;;  %s1157_s1 = inlined_call_operand.hbm [shape: bf16[72,128], index: 1, kind: input, shape index: {}]   ;;  %s1158_s2 = inlined_call_operand.vmem [shape: f32[1,128], index: 2, kind: input, shape index: {}]   ;;  %s1159_s3 = inlined_call_operand.hbm [shape: bf16[128,128], index: 3, kind: input, shape index: {}]   ;;  %s1160_s4 = inlined_call_operand.vmem [shape: f32[1,128], index: 4, kind: input, shape index: {}]   ;;  %s1161_s5 = inlined_call_operand.hbm [shape: bf16[128,384], index: 5, kind: input, shape index: {}]   ;;  %s1162_s6 = inlined_call_operand.vmem [shape: f32[1,384], index: 6, kind: input, shape index: {}]   ;;  %s1163_s7 = inlined_call_operand.hbm [shape: f32[32,72], index: 7, kind: output, shape index: {0}]   ;;  %s1164_s8 = inlined_call_operand.hbm [shape: f32[32,144], index: 8, kind: output, shape index: {1}]  }
   0x1   :  { %15 = vsyncpa [#allocation6], 0 }
   0x2   :  { %16 = vsyncpa [#allocation9], 0 }
   0x3   :  { %17 = vsyncpa [#allocation4], 0 }
   0x4   :  { %18 = vsyncpa [#allocation12], 0  ;;  %s979_s27 = smov [#allocation5]   ;;  %s837_s9 = scalar_lea.hbm %s1157_s1, 576 }
   0x5   :  { %s36_s28 = sshll.u32 %s979_s27, 4  ;;  %p838_p0 = scmp.ne.s32.totalorder %s1157_s1, %s837_s9  ;;  %s37_s28 = int_to_ptr.vmem [resolvable:$true] %s36_s28 }
   0x6   :  { %p841_p1 = scmp.lt.u32.totalorder %s837_s9, %s1157_s1 }
   0x8   :  { %p843_p2 = pnand %p841_p1, %p838_p0 }
   0xa   :  { %846 = shalt.err (!%p843_p2)
}
   0xb   :  { %s847_s14 = scalar_lea.vmem %s37_s28, 576  ;;  %p852_p4 = scmp.lt.s32.totalorder %s37_s28, %s37_s28 }
   0xc   :  { %p848_p3 = scmp.ne.s32.totalorder %s37_s28, %s847_s14  ;;  %p853_p5 = scmp.lt.s32.totalorder %s847_s14, %s847_s14 }
   0xe   :  { %p854_p6 = por %p853_p5, %p852_p4 }
  0x10   :  { %p855_p7 = pnand %p854_p6, %p848_p3 }
  0x12   :  { %858 = shalt.err (!%p855_p7)
}
  0x13   :  { %s980_s15 = smov 64   ;;  %s981_s16 = smov 4  }
  0x14   :  { %42 = dma.hbm_to_vmem [thread:$0]  %s1157_s1, 576, %s37_s28, [#allocation6], %s980_s15, %s980_s15, %s981_s16  }
  0x15   :  { %s982_s19 = smov [#allocation2]   ;;  %s859_s23 = scalar_lea.hbm %s1156_s0, 512 }
  0x16   :  { %s24_s20 = sshll.u32 %s982_s19, 4  ;;  %p860_p8 = scmp.ne.s32.totalorder %s1156_s0, %s859_s23  ;;  %s25_s20 = int_to_ptr.vmem [resolvable:$true] %s24_s20 }
  0x17   :  { %p863_p9 = scmp.lt.u32.totalorder %s859_s23, %s1156_s0 }
  0x19   :  { %p865_p10 = pnand %p863_p9, %p860_p8 }
  0x1b   :  { %868 = shalt.err (!%p865_p10)
}
  0x1c   :  { %s869_s29 = scalar_lea.vmem %s25_s20, 512  ;;  %p874_p12 = scmp.lt.s32.totalorder %s25_s20, %s25_s20 }
  0x1d   :  { %p870_p11 = scmp.ne.s32.totalorder %s25_s20, %s869_s29  ;;  %p875_p13 = scmp.lt.s32.totalorder %s869_s29, %s869_s29 }
  0x1f   :  { %p876_p0 = por %p875_p13, %p874_p12 }
  0x21   :  { %p877_p1 = pnand %p876_p0, %p870_p11 }
  0x23   :  { %880 = shalt.err (!%p877_p1)
}
  0x24   :  { %s983_s1 = smov 128   ;;  %s984_s28 = smov 8  }
  0x25   :  { %30 = dma.hbm_to_vmem [thread:$0]  %s1156_s0, 512, %s25_s20, [#allocation3], %s983_s1, %s983_s1, %s984_s28  }
  0x26   :  { %s985_s10 = smov [#allocation7]   ;;  %s986_s12 = smov [#allocation8]  }
  0x27   :  { %s50_s11 = sshll.u32 %s985_s10, 4  ;;  %s64_s13 = sshll.u32 %s986_s12, 4  ;;  %s51_s11 = int_to_ptr.vmem [resolvable:$true] %s50_s11  ;;  %s1069_s13 = int_to_ptr.vmem [resolvable:$true] %s64_s13 }
  0x28   :  { %s881_s18 = scalar_lea.hbm %s1159_s3, 1024 }
  0x29   :  { %p882_p2 = scmp.ne.s32.totalorder %s1159_s3, %s881_s18  ;;  %p885_p3 = scmp.lt.u32.totalorder %s881_s18, %s1159_s3 }
  0x2b   :  { %p887_p4 = pnand %p885_p3, %p882_p2 }
  0x2d   :  { %890 = shalt.err (!%p887_p4)
}
  0x2e   :  { %s891_s0 = scalar_lea.vmem %s51_s11, 1024  ;;  %p896_p6 = scmp.lt.s32.totalorder %s51_s11, %s51_s11 }
  0x2f   :  { %p892_p5 = scmp.ne.s32.totalorder %s51_s11, %s891_s0  ;;  %p897_p7 = scmp.lt.s32.totalorder %s891_s0, %s891_s0 }
  0x31   :  { %p898_p8 = por %p897_p7, %p896_p6 }
  0x33   :  { %p899_p9 = pnand %p898_p8, %p892_p5 }
  0x35   :  { %902 = shalt.err (!%p899_p9)
}
  0x36   :  { %56 = dma.hbm_to_vmem [thread:$0]  %s1159_s3, 1024, %s51_s11, [#allocation6], %s980_s15, %s980_s15, %s981_s16  }
  0x37   :  { %s903_s27 = scalar_lea.hbm %s1161_s5, 3072 }
  0x38   :  { %p904_p10 = scmp.ne.s32.totalorder %s1161_s5, %s903_s27  ;;  %p907_p11 = scmp.lt.u32.totalorder %s903_s27, %s1161_s5 }
  0x3a   :  { %p909_p12 = pnand %p907_p11, %p904_p10 }
  0x3c   :  { %912 = shalt.err (!%p909_p12)
}
  0x3d   :  { %s913_s12 = scalar_lea.vmem %s1069_s13, 3072  ;;  %p918_p0 = scmp.lt.s32.totalorder %s1069_s13, %s1069_s13 }
  0x3e   :  { %p914_p13 = scmp.ne.s32.totalorder %s1069_s13, %s913_s12  ;;  %p919_p1 = scmp.lt.s32.totalorder %s913_s12, %s913_s12 }
  0x40   :  { %p920_p2 = por %p919_p1, %p918_p0 }
  0x42   :  { %p921_p3 = pnand %p920_p2, %p914_p13 }
  0x44   :  { %924 = shalt.err (!%p921_p3)
}
  0x45   :  { %s987_s3 = smov 192   ;;  %s988_s15 = smov 12  }
  0x46   :  { %70 = dma.hbm_to_vmem [thread:$0]  %s1161_s5, 3072, %s1069_s13, [#allocation9], %s987_s3, %s987_s3, %s988_s15  }
  0x47   :  { %969 = dma.done.wait [#allocation3], 512  }
  0x48   :  { %970 = vsyncadd [#allocation3], 4294966784 }
  0x49   :  { %971 = dma.done.wait [#allocation6], 1600  }
  0x4a   :  { %972 = vsyncadd [#allocation6], 4294965696 }
  0x4b   :  { %973 = dma.done.wait [#allocation9], 3072  }
  0x4c   :  { %974 = vsyncadd [#allocation9], 4294964224  ;;  %v792_v0 = vld [vmem:[#allocation5] sm:$0xff]   ;;  %v793_v1 = vld [vmem:[#allocation5 + $0x8] sm:$0xff]   ;;  %vm135_vm0 = vcmask 588800   ;;  %vm142_vm1 = vcmask 1043456  }
  0x4d   :  { %722 = vmatprep.subr.bf16.mxu0 %v792_v0  ;;  %v794_v2 = vld [vmem:[#allocation5 + $0x10] sm:$0xff]   ;;  %v86_v3 = vld [vmem:[#allocation2] sm:$0xff]  ;;  %v87_v4 = vld [vmem:[#allocation2 + $0x8] sm:$0xff]  ;;  %v989_v59 = vmov 0   ;;  %vm611_vm2 = vcmask 130048   ;;  %s991_s19 = smov [#allocation11]  }
  0x4e   :  { %723 = vmatpush3.bf16.msra.mxu0 %v792_v0  ;;  %v90_v5 = vpack.c.bf16 %v87_v4, %v86_v3  ;;  %v797_v6 = vld [vmem:[#allocation7] sm:$0xff]   ;;  %v798_v7 = vld [vmem:[#allocation7 + $0x8] sm:$0xff]   ;;  %v795_v8 = vld [vmem:[#allocation5 + $0x18] sm:$0xff]   ;;  %s636_s21 = sshll.u32 %s991_s19, 4  ;;  %s1121_s21 = int_to_ptr.vmem [resolvable:$true] %s636_s21 }
  0x4f   :  { %724 = vmatprep.subr.bf16.mxu0 %v793_v1  ;;  %736 = vmatprep.subr.bf16.mxu1 %v797_v6  ;;  %v796_v9 = vld [vmem:[#allocation5 + $0x20] ss:$0 sps:$4 sm:$0xff]   ;;  %v799_v10 = vld [vmem:[#allocation7 + $0x10] sm:$0xff]   ;;  %v801_v15 = vld [vmem:[#allocation7 + $0x20] sm:$0xff]  }
  0x50   :  { %732 = vmatprep.mubr.msk.bf16.mxu0 %vm135_vm0, %v90_v5  ;;  %737 = vmatpush3.bf16.msra.mxu1 %v797_v6  ;;  %v88_v11 = vld [vmem:[#allocation2 + $0x10] sm:$0xff]  ;;  %v89_v12 = vld [vmem:[#allocation2 + $0x18] sm:$0xff]  ;;  %v144_v14 = vsel %vm142_vm1, %v796_v9, 0  ;;  %v811_v23 = vld [vmem:[#allocation8 + $0x1c] ss:$12 sps:$4 sm:$0xff]  }
  0x51   :  { %738 = vmatprep.subr.bf16.mxu1 %v798_v7  ;;  %v800_v13 = vld [vmem:[#allocation7 + $0x18] sm:$0xff]   ;;  %v91_v16 = vpack.c.bf16 %v89_v12, %v88_v11  ;;  %v802_v17 = vld [vmem:[#allocation7 + $0x28] sm:$0xff]   ;;  %v803_v18 = vld [vmem:[#allocation7 + $0x30] sm:$0xff]   ;;  %v361_v11 = vlaneseq }
  0x52   :  { %725 = vmatpush3.bf16.msra.mxu0 %v793_v1  ;;  %v804_v19 = vld [vmem:[#allocation7 + $0x38] sm:$0xff]   ;;  %v805_v20 = vld [vmem:[#allocation8] ss:$12 sps:$4 sm:$0xff]   ;;  %v807_v21 = vld [vmem:[#allocation8 + $0x4] ss:$12 sps:$4 sm:$0xff]  }
  0x53   :  { %726 = vmatprep.subr.bf16.mxu0 %v794_v2  ;;  %v808_v22 = vld [vmem:[#allocation8 + $0x8] ss:$12 sps:$4 sm:$0xff]   ;;  %v809_v24 = vld [vmem:[#allocation8 + $0x18] ss:$12 sps:$4 sm:$0xff]   ;;  %v813_v26 = vld [vmem:[#allocation8 + $0x30] ss:$12 sps:$4 sm:$0xff]  }
  0x54   :  { %739 = vmatpush3.bf16.msra.mxu1 %v798_v7  ;;  %v815_v25 = vld [vmem:[#allocation8 + $0x34] ss:$12 sps:$4 sm:$0xff]   ;;  %v819_v27 = vld [vmem:[#allocation8 + $0x4c] ss:$12 sps:$4 sm:$0xff]   ;;  %v823_v29 = vld [vmem:[#allocation8 + $0x64] ss:$12 sps:$4 sm:$0xff]  }
  0x55   :  { %740 = vmatprep.subr.bf16.mxu1 %v799_v10  ;;  %v817_v28 = vld [vmem:[#allocation8 + $0x48] ss:$12 sps:$4 sm:$0xff]   ;;  %v821_v30 = vld [vmem:[#allocation8 + $0x60] ss:$12 sps:$4 sm:$0xff]   ;;  %v825_v32 = vld [vmem:[#allocation8 + $0x78] ss:$12 sps:$4 sm:$0xff]  }
  0x56   :  { %727 = vmatpush3.bf16.msra.mxu0 %v794_v2  ;;  %v827_v31 = vld [vmem:[#allocation8 + $0x7c] ss:$12 sps:$4 sm:$0xff]   ;;  %v812_v48 = vld [vmem:[#allocation8 + $0x20] ss:$12 sps:$4 sm:$0xff]   ;;  %v816_v49 = vld [vmem:[#allocation8 + $0x38] ss:$12 sps:$4 sm:$0xff]  }
  0x57   :  { %728 = vmatprep.subr.bf16.mxu0 %v795_v8  ;;  %v654_v33 = vld [vmem:[%s1158_s2] ss:$0 sm:$0xff]  ;;  %v824_v51 = vld [vmem:[#allocation8 + $0x68] ss:$12 sps:$4 sm:$0xff]   ;;  %v828_v52 = vld [vmem:[#allocation8 + $0x80] ss:$12 sps:$4 sm:$0xff]  }
  0x58   :  { %741 = vmatpush3.bf16.msra.mxu1 %v799_v10  ;;  %v820_v50 = vld [vmem:[#allocation8 + $0x50] ss:$12 sps:$4 sm:$0xff]   ;;  %v831_v53 = vld [vmem:[#allocation8 + $0x94] ss:$12 sps:$4 sm:$0xff]   ;;  %v832_v55 = vld [vmem:[#allocation8 + $0x98] ss:$12 sps:$4 sm:$0xff]  }
  0x59   :  { %742 = vmatprep.subr.bf16.mxu1 %v800_v13  ;;  %v829_v54 = vld [vmem:[#allocation8 + $0x90] ss:$12 sps:$4 sm:$0xff]   ;;  %v835_v56 = vld [vmem:[#allocation8 + $0xac] ss:$12 sps:$4 sm:$0xff]   ;;  %v833_v57 = vld [vmem:[#allocation8 + $0xa8] ss:$12 sps:$4 sm:$0xff]  }
  0x5a   :  { %729 = vmatpush3.bf16.msra.mxu0 %v795_v8  ;;  %v836_v58 = vld [vmem:[#allocation8 + $0xb0] ss:$12 sps:$4 sm:$0xff]   ;;  %v362_v12 = vshrl.u32 %v361_v11, 7 }
  0x5b   :  { %776 = vmatprep.subr.msk.bf16.mxu0 %vm142_vm1, %v796_v9  ;;  %v662_v60 = vld [vmem:[%s1160_s4] ss:$0 sm:$0xff] }
  0x5c   :  { %743 = vmatpush3.bf16.msra.mxu1 %v800_v13  ;;  %v363_v13 = vsub.s32 0, %v362_v12 }
  0x5d   :  { %744 = vmatprep.subr.bf16.mxu1 %v801_v15 }
  0x5e   :  { %731 = vmatpush3.bf16.msra.mxu0 %v144_v14  ;;  %v359_v14 = vld [vmem:[%s1162_s6] sm:$0x7]  ;;  %s990_s6 = smov [#allocation10]  }
  0x5f   :  { %504 = vmatprep.subr.bf16.mxu0 %v807_v21  ;;  %s624_s18 = sshll.u32 %s990_s6, 4  ;;  %s625_s18 = int_to_ptr.vmem [resolvable:$true] %s624_s18 }
  0x60   :  { %745 = vmatpush3.bf16.msra.mxu1 %v801_v15  ;;  %v367_v15 = vsub.s32 1, %v362_v12  ;;  %s925_s22 = scalar_lea.vmem %s625_s18, 512  ;;  %p930_p5 = scmp.lt.s32.totalorder %s625_s18, %s625_s18 }
  0x61   :  { %733 = vmatmul.mubr.msk.bf16.vlgmr.msra.gmra.mrb[0].mxu0 %vm135_vm0, %v91_v16  ;;  %746 = vmatprep.subr.bf16.mxu1 %v802_v17  ;;  %v371_v16 = vsub.s32 2, %v362_v12  ;;  %p926_p4 = scmp.ne.s32.totalorder %s625_s18, %s925_s22  ;;  %p931_p6 = scmp.lt.s32.totalorder %s925_s22, %s925_s22 }
  0x62   :  { %505 = vmatpush1.bf16.msra.mxu0 %v805_v20  ;;  %536 = vmatprep.mubr.bf16.mxu0 %v989_v59 }
  0x63   :  { %506 = vmatprep.subr.bf16.mxu0 %v811_v23  ;;  %p932_p7 = por %p931_p6, %p930_p5 }
  0x64   :  { %747 = vmatpush3.bf16.msra.mxu1 %v802_v17  ;;  %v364_v17 = vrot.slane %v359_v14, %v363_v13 }
  0x65   :  { %748 = vmatprep.subr.bf16.mxu1 %v803_v18  ;;  %p933_p8 = pnand %p932_p7, %p926_p4 }
  0x66   :  { %507 = vmatpush1.bf16.msra.mxu0 %v809_v24 }
  0x67   :  { %508 = vmatprep.subr.bf16.mxu0 %v815_v25 }
  0x68   :  { %749 = vmatpush3.bf16.msra.mxu1 %v803_v18  ;;  %v368_v18 = vrot.slane %v359_v14, %v367_v15 }
  0x69   :  { %750 = vmatprep.subr.bf16.mxu1 %v804_v19 }
  0x6a   :  { %509 = vmatpush1.bf16.msra.mxu0 %v813_v26 }
  0x6b   :  { %510 = vmatprep.subr.bf16.mxu0 %v819_v27 }
  0x6c   :  { %751 = vmatpush3.bf16.msra.mxu1 %v804_v19  ;;  %v372_v19 = vrot.slane %v359_v14, %v371_v16 }
  0x6d   :  { %756 = vmatprep.subr.bf16.mxu1 %v808_v22 }
  0x6e   :  { %511 = vmatpush1.bf16.msra.mxu0 %v817_v28 }
  0x6f   :  { %512 = vmatprep.subr.bf16.mxu0 %v823_v29 }
  0x72   :  { %513 = vmatpush1.bf16.msra.mxu0 %v821_v30 }
  0x73   :  { %514 = vmatprep.subr.bf16.mxu0 %v827_v31 }
  0x76   :  { %515 = vmatpush1.bf16.msra.mxu0 %v825_v32 }
  0x77   :  { %516 = vmatprep.subr.bf16.mxu0 %v831_v53 }
  0x7a   :  { %517 = vmatpush1.bf16.msra.mxu0 %v829_v54 }
  0x7b   :  { %518 = vmatprep.subr.bf16.mxu0 %v835_v56 }
  0x7e   :  { %519 = vmatpush1.bf16.msra.mxu0 %v833_v57 }
 0x134   :  { %v734_v34 = vpop.f32.mrb[0].mxu0 }
 0x135   :  { %v189_v35 = vadd.f32 %v734_v34, %v654_v33  ;;  %v180_v36 = vpop.f32.mrb[1].mxu0 }
 0x136   :  { %v181_v37 = vadd.f32 %v654_v33, %v180_v36  ;;  %v735_v38 = vpop.f32.mrb[2].mxu0 }
 0x137   :  { %v192_v39 = vadd.f32 %v735_v38, %v654_v33  ;;  %v183_v40 = vpop.f32.mrb[3].mxu0  ;;  %v197_v42 = vmax.f32 %v189_v35, 0.0 }
 0x138   :  { %v184_v41 = vadd.f32 %v654_v33, %v183_v40  ;;  %v195_v44 = vmax.f32 %v181_v37, 0.0 }
 0x139   :  { %v198_v43 = vmax.f32 %v192_v39, 0.0 }
 0x13a   :  { %v196_v45 = vmax.f32 %v184_v41, 0.0 }
 0x13b   :  { %v200_v46 = vpack.c.bf16 %v198_v43, %v197_v42 }
 0x13c   :  { %v199_v47 = vpack.c.bf16 %v196_v45, %v195_v44 }
 0x13e   :  { %752 = vmatprep.mubr.bf16.mxu1 %v199_v47 }
 0x13f   :  { %753 = vmatmul.mubr.bf16.vlgmr.msra.gmra.mrb[0].mxu1 %v200_v46 }
 0x140   :  { %757 = vmatpush3.bf16.msra.mxu1 %v808_v22 }
 0x141   :  { %758 = vmatprep.subr.bf16.mxu1 %v812_v48 }
 0x144   :  { %759 = vmatpush3.bf16.msra.mxu1 %v812_v48 }
 0x145   :  { %760 = vmatprep.subr.bf16.mxu1 %v816_v49 }
 0x148   :  { %761 = vmatpush3.bf16.msra.mxu1 %v816_v49 }
 0x149   :  { %762 = vmatprep.subr.bf16.mxu1 %v820_v50 }
 0x14c   :  { %763 = vmatpush3.bf16.msra.mxu1 %v820_v50 }
 0x14d   :  { %764 = vmatprep.subr.bf16.mxu1 %v824_v51 }
 0x150   :  { %765 = vmatpush3.bf16.msra.mxu1 %v824_v51 }
 0x151   :  { %766 = vmatprep.subr.bf16.mxu1 %v828_v52 }
 0x154   :  { %767 = vmatpush3.bf16.msra.mxu1 %v828_v52 }
 0x155   :  { %768 = vmatprep.subr.bf16.mxu1 %v832_v55 }
 0x158   :  { %769 = vmatpush3.bf16.msra.mxu1 %v832_v55 }
 0x159   :  { %770 = vmatprep.subr.bf16.mxu1 %v836_v58 }
 0x15c   :  { %771 = vmatpush3.bf16.msra.mxu1 %v836_v58 }
 0x212   :  { %v754_v61 = vpop.f32.mrb[0].mxu1 }
 0x213   :  { %v315_v62 = vadd.f32 %v754_v61, %v662_v60  ;;  %v306_v63 = vpop.f32.mrb[1].mxu1 }
 0x214   :  { %v307_v0 = vadd.f32 %v662_v60, %v306_v63  ;;  %v755_v1 = vpop.f32.mrb[2].mxu1 }
 0x215   :  { %v318_v2 = vadd.f32 %v755_v1, %v662_v60  ;;  %v309_v3 = vpop.f32.mrb[3].mxu1  ;;  %v323_v5 = vmax.f32 %v315_v62, 0.0 }
 0x216   :  { %v310_v4 = vadd.f32 %v662_v60, %v309_v3  ;;  %v321_v7 = vmax.f32 %v307_v0, 0.0 }
 0x217   :  { %v324_v6 = vmax.f32 %v318_v2, 0.0 }
 0x218   :  { %v322_v8 = vmax.f32 %v310_v4, 0.0 }
 0x219   :  { %v326_v9 = vpack.c.bf16 %v324_v6, %v323_v5 }
 0x21a   :  { %v325_v10 = vpack.c.bf16 %v322_v8, %v321_v7 }
 0x21c   :  { %537 = vmatmul.mubr.bf16.vlgmr.msra.gmra.mrb[4].mxu0 %v325_v10  ;;  %772 = vmatprep.mubr.bf16.mxu1 %v325_v10 }
 0x21d   :  { %773 = vmatmul.mubr.bf16.vlgmr.msra.gmra.mrb[4].mxu1 %v326_v9  ;;  %546 = vmatprep.mubr.bf16.mxu0 %v989_v59 }
 0x224   :  { %547 = vmatmul.mubr.bf16.gmra.mrb[8].mxu0 %v326_v9 }
 0x2ef   :  { %v538_v20 = vpop.f32.mrb[4].mxu0 }
 0x2f0   :  { %v539_v21 = vadd.f32 %v538_v20, %v364_v17  ;;  %v540_v22 = vpop.f32.mrb[5].mxu0  ;;  %v774_v23 = vpop.f32.mrb[4].mxu1 }
 0x2f1   :  { %v541_v24 = vadd.f32 %v540_v22, %v368_v18  ;;  %v600_v25 = vadd.f32 %v774_v23, %v372_v19  ;;  %v542_v26 = vpop.f32.mrb[6].mxu0  ;;  %v591_v27 = vpop.f32.mrb[5].mxu1 }
 0x2f2   :  { %606 = vst.msk [vmem:[#allocation10] sm:$0xff] %vm135_vm0, %v539_v21  ;;  %v543_v28 = vadd.f32 %v542_v26, %v364_v17  ;;  %v592_v29 = vadd.f32 %v591_v27, %v372_v19  ;;  %v544_v30 = vpop.f32.mrb[7].mxu0  ;;  %v775_v31 = vpop.f32.mrb[6].mxu1 }
 0x2f3   :  { %610 = vst [vmem:[#allocation11] sm:$0xff] %v541_v24  ;;  %616 = vst.msk [vmem:[#allocation11 + $0x28] sm:$0xff] %vm611_vm2, %v600_v25  ;;  %v545_v32 = vadd.f32 %v544_v30, %v368_v18  ;;  %v603_v33 = vadd.f32 %v775_v31, %v372_v19  ;;  %v594_v34 = vpop.f32.mrb[7].mxu1 }
 0x2f4   :  { %607 = vst.msk [vmem:[#allocation10 + $0x8] sm:$0xff] %vm135_vm0, %v543_v28  ;;  %v595_v35 = vadd.f32 %v594_v34, %v372_v19 }
 0x2f5   :  { %612 = vst.msk [vmem:[#allocation11 + $0x8] sm:$0xff] %vm611_vm2, %v592_v29  ;;  %613 = vst [vmem:[#allocation11 + $0x10] sm:$0xff] %v545_v32 }
 0x2f6   :  { %618 = vst.msk [vmem:[#allocation11 + $0x38] sm:$0xff] %vm611_vm2, %v603_v33  ;;  %614 = vst.msk [vmem:[#allocation11 + $0x18] sm:$0xff] %vm611_vm2, %v595_v35 }
 0x2f7   :  { %v548_v36 = vpop.f32.mrb[8].mxu0 }
 0x2f8   :  { %v549_v37 = vadd.f32 %v548_v36, %v364_v17  ;;  %v550_v38 = vpop.f32.mrb[9].mxu0 }
 0x2f9   :  { %v551_v39 = vadd.f32 %v550_v38, %v368_v18  ;;  %v552_v40 = vpop.f32.mrb[10].mxu0 }
 0x2fa   :  { %608 = vst.msk [vmem:[#allocation10 + $0x10] sm:$0xff] %vm135_vm0, %v549_v37  ;;  %v553_v41 = vadd.f32 %v552_v40, %v364_v17  ;;  %v554_v42 = vpop.f32.mrb[11].mxu0 }
 0x2fb   :  { %615 = vst [vmem:[#allocation11 + $0x20] sm:$0xff] %v551_v39  ;;  %v555_v43 = vadd.f32 %v554_v42, %v368_v18 }
 0x2fc   :  { %609 = vst.msk [vmem:[#allocation10 + $0x18] sm:$0xff] %vm135_vm0, %v553_v41 }
 0x2fd   :  { %617 = vst [vmem:[#allocation11 + $0x30] sm:$0xff] %v555_v43 }
 0x2fe   :  { %936 = shalt.err (!%p933_p8)
}
 0x2ff   :  { %s937_s20 = scalar_lea.hbm %s1163_s7, 512 }
 0x300   :  { %p938_p9 = scmp.ne.s32.totalorder %s1163_s7, %s937_s20  ;;  %p941_p10 = scmp.lt.u32.totalorder %s937_s20, %s1163_s7 }
 0x302   :  { %p943_p11 = pnand %p941_p10, %p938_p9 }
 0x304   :  { %946 = shalt.err (!%p943_p11)
}
 0x305   :  { %630 = dma.vmem_to_hbm [thread:$0]  %s625_s18, 512, %s1163_s7, [#allocation4], %s983_s1, %s983_s1, %s984_s28  }
 0x306   :  { %s947_s9 = scalar_lea.vmem %s1121_s21, 1024  ;;  %p952_p13 = scmp.lt.s32.totalorder %s1121_s21, %s1121_s21 }
 0x307   :  { %p948_p12 = scmp.ne.s32.totalorder %s1121_s21, %s947_s9  ;;  %p953_p0 = scmp.lt.s32.totalorder %s947_s9, %s947_s9 }
 0x309   :  { %p954_p1 = por %p953_p0, %p952_p13 }
 0x30b   :  { %p955_p2 = pnand %p954_p1, %p948_p12 }
 0x30d   :  { %958 = shalt.err (!%p955_p2)
}
 0x30e   :  { %s959_s3 = scalar_lea.hbm %s1164_s8, 1024 }
 0x30f   :  { %p960_p3 = scmp.ne.s32.totalorder %s1164_s8, %s959_s3  ;;  %p963_p4 = scmp.lt.u32.totalorder %s959_s3, %s1164_s8 }
 0x311   :  { %p965_p5 = pnand %p963_p4, %p960_p3 }
 0x313   :  { %968 = shalt.err (!%p965_p5)
}
 0x314   :  { %s992_s7 = smov 256   ;;  %s993_s1 = smov 16  }
 0x315   :  { %642 = dma.vmem_to_hbm [thread:$0]  %s1121_s21, 1024, %s1164_s8, [#allocation12], %s992_s7, %s992_s7, %s993_s1  }
 0x316   :  { %975 = dma.done.wait [#allocation4], 512  }
 0x317   :  { %976 = vsyncadd [#allocation4], 4294966784 }
 0x318   :  { %977 = dma.done.wait [#allocation12], 1024  }
 0x319   :  { %978 = vsyncadd [#allocation12], 4294966272 }
 0x31a   :  { %649 = vsyncpa [#allocation3], 1 }
 0x31b   :  { %650 = vsyncpa [#allocation6], 1 }
 0x31c   :  { %651 = vsyncpa [#allocation9], 1 }
 0x31d   :  { %652 = vsyncpa [#allocation4], 1 }
 0x31e   :  { %653 = vsyncpa [#allocation12], 1 }

</bundles_post_ra>
